<compile_context>
chip_gen: v5e
topology: v5e:2x2
jax: 0.10.0
libtpu: 0.0.40
codegen_flags: <defaults>
</compile_context>

<pallas_src>
import functools

import jax
import jax.numpy as jnp
from jax.experimental import pallas as pl
from jax.experimental.pallas import tpu as pltpu

_WIDTHS = (1024, 512, 256, 128)        # lane-dense slab widths (multiples of 128)
_NONE_BLOCK_ELEMS = 1 << 20            # ~4 MiB f32 / stream, 3 streams on 'none'
_VMEM_LIMIT_NONE = 40 * 1024 * 1024

# Reduce path: ~4 MiB f32 per input block is safe on every generation
# (v7x has only 64 MiB VMEM per TensorCore).  On 128 MiB chips (v5e/v6e),
# grow to ~8 MiB blocks to halve the per-grid-step overhead.
_REDUCE_BLOCK_ELEMS = 1 << 20
_VMEM_LIMIT_REDUCE = 40 * 1024 * 1024
try:  # best-effort, generation-aware sizing; conservative defaults otherwise
    if int(pltpu.get_tpu_info().vmem_capacity_bytes) >= 100 * 1024 * 1024:
        _REDUCE_BLOCK_ELEMS = 1 << 21
        _VMEM_LIMIT_REDUCE = 72 * 1024 * 1024
except Exception:
    pass


def _pick_width(n):
    for w in _WIDTHS:
        if n >= w and n % w == 0:
            return w
    return None


def _huber(x, y, delta):
    # Branch-free Huber: q = min(|d|, delta); loss = q * (|d| - 0.5*q).
    d = x - y
    ad = jnp.abs(d)
    q = jnp.minimum(ad, delta)
    return q * (ad - 0.5 * q)


def _huber_none_kernel(x_ref, y_ref, o_ref, *, delta):
    x = x_ref[...].astype(jnp.float32)
    y = y_ref[...].astype(jnp.float32)
    o_ref[...] = _huber(x, y, delta).astype(o_ref.dtype)


def _huber_reduce_kernel(x_ref, y_ref, o_ref, *, delta, fold, acc_rows):
    k = pl.program_id(1)

    @pl.when(k == 0)
    def _():
        o_ref[...] = jnp.zeros_like(o_ref)

    x = x_ref[...].astype(jnp.float32)
    y = y_ref[...].astype(jnp.float32)
    loss = _huber(x, y, delta)
    if fold > 1:
        # Layout-preserving leading-dim split; sum(axis=0) is pure VPU adds.
        loss = loss.reshape(fold, acc_rows, loss.shape[-1]).sum(axis=0)
    o_ref[...] += loss          # output block = resident VMEM accumulator


@functools.partial(jax.jit, static_argnames=("reduction", "delta"))
def huber_loss(inp, target, reduction="mean", delta=1.0):
    """Equivalent of torch.nn.HuberLoss(reduction=reduction, delta=delta)(inp, target)."""
    if inp.shape != target.shape:
        raise ValueError("input and target must have the same shape")
    if reduction not in ("none", "mean", "sum"):
        raise ValueError(f"unknown reduction: {reduction}")
    delta = float(delta)
    orig_shape, orig_dtype = inp.shape, inp.dtype
    n = inp.size

    x = inp.reshape(-1)
    y = target.reshape(-1)
    w = _pick_width(n)

    # ------------------------- reduction == 'none' -------------------------
    if reduction == "none":
        if w is None:
            # TODO(synk): element counts not divisible by 128 use one fused XLA
            # pass; padding/slicing both inputs to feed the kernel costs more HBM.
            return _huber(x.astype(jnp.float32), y.astype(jnp.float32),
                          delta).astype(orig_dtype).reshape(orig_shape)
        n_rows = n // w
        r_cfg = max(8, _NONE_BLOCK_ELEMS // w)
        r = n_rows if n_rows <= r_cfg else r_cfg      # ragged last block is OK
        x2 = x.reshape(n_rows, w)                     # free views, no copies
        y2 = y.reshape(n_rows, w)
        spec = pl.BlockSpec((r, w), lambda i: (i, 0))
        out2 = pl.pallas_call(
            functools.partial(_huber_none_kernel, delta=delta),
            out_shape=jax.ShapeDtypeStruct((n_rows, w), orig_dtype),
            grid_spec=pltpu.PrefetchScalarGridSpec(
                num_scalar_prefetch=0,
                grid=(pl.cdiv(n_rows, r),),
                in_specs=[spec, spec],
                out_specs=spec),
            compiler_params=pltpu.CompilerParams(
                dimension_semantics=("parallel",),
                vmem_limit_bytes=_VMEM_LIMIT_NONE),
        )(x2, y2)
        return out2.reshape(orig_shape)               # free reshape

    # ----------------------- reduction == 'mean'/'sum' ----------------------
    if w is None:
        # TODO(synk): odd sizes (not a multiple of 128) use one fused XLA pass.
        total = jnp.sum(_huber(x.astype(jnp.float32), y.astype(jnp.float32), delta))
    else:
        n_rows = n // w
        r_cfg = max(8, _REDUCE_BLOCK_ELEMS // w)
        r = n_rows if n_rows <= r_cfg else r_cfg
        full_blocks = n_rows // r
        n_chunks = 2 if full_blocks >= 2 else 1       # both TensorCores on v7x
        steps = full_blocks // n_chunks
        kern_rows = n_chunks * steps * r              # rows covered by the grid
        acc_rows = 8 if r % 8 == 0 else r
        fold = r // acc_rows

        x2 = x.reshape(n_rows, w)                     # free views, no pad/slice
        y2 = y.reshape(n_rows, w)
        in_spec = pl.BlockSpec((r, w), lambda c, k: (c * steps + k, 0))
        partials = pl.pallas_call(
            functools.partial(_huber_reduce_kernel, delta=delta,
                              fold=fold, acc_rows=acc_rows),
            out_shape=jax.ShapeDtypeStruct((n_chunks * acc_rows, w), jnp.float32),
            grid_spec=pltpu.PrefetchScalarGridSpec(
                num_scalar_prefetch=0,
                grid=(n_chunks, steps),
                in_specs=[in_spec, in_spec],
                # Constant block index along the step axis -> output block stays
                # resident in VMEM and acts as the per-chunk accumulator.
                out_specs=pl.BlockSpec((acc_rows, w), lambda c, k: (c, 0))),
            compiler_params=pltpu.CompilerParams(
                dimension_semantics=("parallel", "arbitrary"),
                vmem_limit_bytes=_VMEM_LIMIT_REDUCE),
        )(x2, y2)
        total = jnp.sum(partials)

        rem = n - kern_rows * w                       # < ~2 blocks, tiny jnp pass
        if rem:
            total = total + jnp.sum(
                _huber(x[kern_rows * w:].astype(jnp.float32),
                       y[kern_rows * w:].astype(jnp.float32), delta))

    if reduction == "sum":
        return total.astype(orig_dtype)
    return (total / n).astype(orig_dtype)


if __name__ == "__main__":
    key = jax.random.PRNGKey(0)
    k1, k2, k3, k4 = jax.random.split(key, 4)

    def ref_huber(a, b, delta):
        d = a.astype(jnp.float32) - b.astype(jnp.float32)
        ad = jnp.abs(d)
        return jnp.where(ad < delta, 0.5 * d * d, delta * (ad - 0.5 * delta))

    # Small shape consistent with an element-wise loss over feature maps.
    shape = (2, 4, 16, 16)
    x = jax.random.normal(k1, shape, jnp.float32)
    y = jax.random.normal(k2, shape, jnp.float32) * 2.0   # some |x - y| > delta

    out_mean = jax.block_until_ready(huber_loss(x, y))     # default: mean, delta=1
    ref_mean = jnp.mean(ref_huber(x, y, 1.0))
    assert jnp.allclose(out_mean, ref_mean, rtol=1e-5, atol=1e-6), (out_mean, ref_mean)

    out_sum = jax.block_until_ready(huber_loss(x, y, reduction="sum"))
    ref_sum = jnp.sum(ref_huber(x, y, 1.0))
    assert jnp.allclose(out_sum, ref_sum, rtol=1e-5, atol=1e-4), (out_sum, ref_sum)

    out_none = jax.block_until_ready(huber_loss(x, y, reduction="none", delta=1.5))
    ref_none = ref_huber(x, y, 1.5)
    assert out_none.shape == shape and out_none.dtype == x.dtype
    assert jnp.allclose(out_none, ref_none, rtol=1e-5, atol=1e-6)

    # Larger case exercising the chunked multi-block path + jnp remainder.
    big = (3, 1200, 1024)
    xb = jax.random.normal(k3, big, jnp.float32)
    yb = jax.random.normal(k4, big, jnp.float32)
    out_big = jax.block_until_ready(huber_loss(xb, yb, reduction="mean", delta=0.7))
    ref_big = jnp.mean(ref_huber(xb, yb, 0.7))
    assert jnp.allclose(out_big, ref_big, rtol=1e-4, atol=1e-5), (out_big, ref_big)

    print("KERNEL_OK")
</pallas_src>

<mosaic_0001>
module attributes {stable_mosaic.version = 11 : i64} {
  func.func @_huber_reduce_kernel(%arg0: i32, %arg1: i32, %arg2: memref<2x1024xf32, #tpu.memory_space<vmem>>, %arg3: memref<2x1024xf32, #tpu.memory_space<vmem>>, %arg4: memref<2x1024xf32, #tpu.memory_space<vmem>>) attributes {dimension_semantics = [#tpu.dimension_semantics<parallel>, #tpu.dimension_semantics<arbitrary>], iteration_bounds = array<i64: 1, 1>, scalar_prefetch = 0 : i64, scratch_operands = 0 : i64, tpu.core_type = #tpu.core_type<tc>, window_params = [{transform_indices = @transform_0, window_bounds = array<i64: 2, 1024>}, {transform_indices = @transform_1, window_bounds = array<i64: 2, 1024>}, {transform_indices = @transform_2, window_bounds = array<i64: 2, 1024>}]} {
    %c0_i32 = arith.constant 0 : i32
    %0 = arith.cmpi eq, %arg1, %c0_i32 : i32
    %1 = arith.extui %0 : i1 to i32
    %c0_i32_0 = arith.constant 0 : i32
    %2 = arith.cmpi ne, %1, %c0_i32_0 : i32
    scf.if %2 {
      %cst_9 = arith.constant 0.000000e+00 : f32
      %16 = vector.broadcast %cst_9 : f32 to vector<2x1024xf32>
      %c0_10 = arith.constant 0 : index
      %c0_11 = arith.constant 0 : index
      %17 = vector.load %arg4[%c0_10, %c0_11] : memref<2x1024xf32, #tpu.memory_space<vmem>>, vector<2x1024xf32>
      tpu.vector_store %arg4[%c0_10, %c0_11], %16 {strides = array<i32>} : memref<2x1024xf32, #tpu.memory_space<vmem>>, vector<2x1024xf32>,
    } else {
    }
    %c0 = arith.constant 0 : index
    %c0_1 = arith.constant 0 : index
    %3 = vector.load %arg2[%c0, %c0_1] : memref<2x1024xf32, #tpu.memory_space<vmem>>, vector<2x1024xf32>
    %c0_2 = arith.constant 0 : index
    %c0_3 = arith.constant 0 : index
    %4 = vector.load %arg3[%c0_2, %c0_3] : memref<2x1024xf32, #tpu.memory_space<vmem>>, vector<2x1024xf32>
    %5 = arith.subf %3, %4 : vector<2x1024xf32>
    %6 = math.absf %5 : vector<2x1024xf32>
    %cst = arith.constant 1.000000e+00 : f32
    %7 = vector.broadcast %cst : f32 to vector<2x1024xf32>
    %8 = arith.minimumf %6, %7 : vector<2x1024xf32>
    %cst_4 = arith.constant 5.000000e-01 : f32
    %9 = vector.broadcast %cst_4 : f32 to vector<2x1024xf32>
    %10 = arith.mulf %9, %8 : vector<2x1024xf32>
    %11 = arith.subf %6, %10 : vector<2x1024xf32>
    %12 = arith.mulf %8, %11 : vector<2x1024xf32>
    %c0_5 = arith.constant 0 : index
    %c0_6 = arith.constant 0 : index
    %13 = vector.load %arg4[%c0_5, %c0_6] : memref<2x1024xf32, #tpu.memory_space<vmem>>, vector<2x1024xf32>
    %14 = arith.addf %13, %12 : vector<2x1024xf32>
    %c0_7 = arith.constant 0 : index
    %c0_8 = arith.constant 0 : index
    %15 = vector.load %arg4[%c0_7, %c0_8] : memref<2x1024xf32, #tpu.memory_space<vmem>>, vector<2x1024xf32>
    tpu.vector_store %arg4[%c0_7, %c0_8], %14 {strides = array<i32>} : memref<2x1024xf32, #tpu.memory_space<vmem>>, vector<2x1024xf32>,
    return
  }
  func.func @transform_0(%arg0: i32, %arg1: i32) -> (i32, i32) {
    %c1_i32 = arith.constant 1 : i32
    %0 = arith.muli %arg0, %c1_i32 : i32
    %1 = arith.addi %0, %arg1 : i32
    %c0_i32 = arith.constant 0 : i32
    %c0_i32_0 = arith.constant 0 : i32
    return %1, %c0_i32 : i32, i32
  }
  func.func @transform_1(%arg0: i32, %arg1: i32) -> (i32, i32) {
    %c1_i32 = arith.constant 1 : i32
    %0 = arith.muli %arg0, %c1_i32 : i32
    %1 = arith.addi %0, %arg1 : i32
    %c0_i32 = arith.constant 0 : i32
    %c0_i32_0 = arith.constant 0 : i32
    return %1, %c0_i32 : i32, i32
  }
  func.func @transform_2(%arg0: i32, %arg1: i32) -> (i32, i32) {
    %c0_i32 = arith.constant 0 : i32
    %c0_i32_0 = arith.constant 0 : i32
    return %arg0, %c0_i32 : i32, i32
  }
}

</mosaic_0001>

<bundles_post_ra>
// kernel: huber_loss.1
= control target key start
LH: loop header
LB: loop body
LE: loop exit
PB: predicated region body
PF: predicated region fallthrough
CT: control target
= control target key end

     0   :  { %s129_s0 = inlined_call_operand.vmem [shape: f32[2,1024], index: 0, kind: input, shape index: {}]   ;;  %s130_s1 = inlined_call_operand.vmem [shape: f32[2,1024], index: 1, kind: input, shape index: {}]   ;;  %s131_s2 = inlined_call_operand.vmem [shape: f32[2,1024], index: 2, kind: output, shape index: {}]  }
   0x1   :  { %v57_v0 = vld [vmem:[%s129_s0] sm:$0xff]  ;;  %v58_v2 = vld [vmem:[%s129_s0 + $0x8] sm:$0xff] }
   0x2   :  { %v59_v1 = vld [vmem:[%s130_s1] sm:$0xff]  ;;  %v60_v4 = vld [vmem:[%s130_s1 + $0x8] sm:$0xff] }
   0x3   :  { %v61_v3 = vsub.f32 %v57_v0, %v59_v1  ;;  %v62_v5 = vsub.f32 %v58_v2, %v60_v4 }
   0x5   :  { %v63_v6 = vand.u32 2147483647, %v61_v3  ;;  %v64_v7 = vand.u32 2147483647, %v62_v5 }
   0x7   :  { %v65_v8 = vmin.f32 %v63_v6, 1.0  ;;  %v66_v9 = vmin.f32 %v64_v7, 1.0 }
   0x9   :  { %v67_v10 = vmul.f32 0.5, %v65_v8  ;;  %v68_v11 = vmul.f32 0.5, %v66_v9 }
   0xb   :  { %v69_v12 = vsub.f32 %v63_v6, %v67_v10  ;;  %v70_v13 = vsub.f32 %v64_v7, %v68_v11 }
   0xd   :  { %v71_v14 = vmul.f32 %v69_v12, %v65_v8  ;;  %v72_v15 = vmul.f32 %v70_v13, %v66_v9 }
   0xf   :  { %77 = vst [vmem:[%s131_s2] sm:$0xff] %v71_v14 }
  0x10   :  { %78 = vst [vmem:[%s131_s2 + $0x8] sm:$0xff] %v72_v15 }

</bundles_post_ra>
